<compile_context>
chip_gen: v6e
topology: v6e:2x2x1
jax: 0.10.0
libtpu: 0.0.40
codegen_flags: <defaults>
</compile_context>

<pallas_src>
import functools

import jax
import jax.numpy as jnp
from jax.experimental import pallas as pl
from jax.experimental.pallas import tpu as pltpu


def _round_up(x, m):
    return -(-x // m) * m


# ---------------------------------------------------------------------------
# Kernels: one grid step relayouts R whole rows-of-patches.
#   x_ref: (R, p, w, p*C)   "rows-of-patches" view of the NHWC image
#   o_ref: (R, w, p*p*C)    lane-dense patch vectors
# ---------------------------------------------------------------------------
def _patches_concat_kernel(x_ref, o_ref, *, p):
    # Whole-block relayout: a single trailing-axis concatenation of the p
    # per-patch image rows builds the (p1 p2 c) patch vectors in registers,
    # followed by one dense store per block.
    o_ref[...] = jnp.concatenate([x_ref[:, r] for r in range(p)], axis=-1)


def _patches_store_kernel(x_ref, o_ref, *, p, pc):
    # Same relayout expressed as p static (unrolled) lane-offset stores; used
    # only if the installed Mosaic rejects the unaligned lane-dim concatenate.
    for r in range(p):  # static Python loop, p is small
        o_ref[:, :, pl.ds(r * pc, pc)] = x_ref[:, r]


# ---------------------------------------------------------------------------
# pallas_call builder + one-time kernel-variant selection
# ---------------------------------------------------------------------------
def _padded_row_bytes(p, w, pc, itemsize):
    """Padded (8,128)-tiled VMEM bytes of ONE row-of-patches (input + output)."""
    ppc = p * pc
    in_bytes = p * _round_up(w, 8) * _round_up(pc, 128) * itemsize
    out_bytes = _round_up(w, 8) * _round_up(ppc, 128) * itemsize
    return in_bytes + out_bytes


def _choose_row_chunk(n_rows, padded_row_bytes, *, target_bytes=4 << 20, min_steps=8):
    """Rows-of-patches per grid step.

    Sized from the PADDED footprint (the trailing dims pad to 128 lanes),
    targeting ~4 MiB per in+out block pair, while keeping at least `min_steps`
    grid steps when possible (>= 4 per TensorCore on v7x's 2-core chips) so the
    'parallel' axis splits across cores *and* still overlaps block DMAs.
    """
    r = max(1, min(n_rows, target_bytes // max(padded_row_bytes, 1)))
    if n_rows >= min_steps:
        r = min(r, n_rows // min_steps)
    while n_rows % r:  # keep the grid exact (no partial blocks)
        r -= 1
    return r


def _pallas_patches(x, p, pc, R, use_concat):
    """x: (n_rows, p, w, p*C) -> (n_rows, w, p*p*C) via one Pallas pass."""
    n_rows, _, w, _ = x.shape
    ppc = p * pc
    itemsize = x.dtype.itemsize

    if use_concat:
        kernel = functools.partial(_patches_concat_kernel, p=p)
    else:
        kernel = functools.partial(_patches_store_kernel, p=p, pc=pc)

    # 2 operands x 2 pipeline buffers of padded blocks, plus slack; capped so
    # it also fits under v7x's 64 MiB physical VMEM.
    row_bytes = _padded_row_bytes(p, w, pc, itemsize)
    vmem_limit = int(min(64 << 20, max(32 << 20, 4 * R * row_bytes + (4 << 20))))

    return pl.pallas_call(
        kernel,
        out_shape=jax.ShapeDtypeStruct((n_rows, w, ppc), x.dtype),
        grid=(n_rows // R,),
        in_specs=[pl.BlockSpec((R, p, w, pc), lambda i: (i, 0, 0, 0))],
        out_specs=pl.BlockSpec((R, w, ppc), lambda i: (i, 0, 0)),
        compiler_params=pltpu.CompilerParams(
            dimension_semantics=("parallel",),
            vmem_limit_bytes=vmem_limit,
        ),
        # Pure data movement: one read + one write of the tensor.
        cost_estimate=pl.CostEstimate(
            flops=0, transcendentals=0, bytes_accessed=2 * x.size * itemsize),
    )(x)


@functools.cache
def _concat_kernel_supported(p, pc, dtype_name):
    """One-time cached capability probe (tiny shapes): does this Mosaic build
    lower an unaligned lane-dim concatenate?  The hot path then uses a single
    pre-selected kernel variant with no per-call try/except or host syncs."""
    try:
        x = jnp.zeros((2, p, 8, pc), jnp.dtype(dtype_name))
        jax.block_until_ready(_pallas_patches(x, p, pc, R=1, use_concat=True))
        return True
    except Exception:
        return False


# ---------------------------------------------------------------------------
# Public wrapper
# ---------------------------------------------------------------------------
def extract_patches(images, patch_size=6, *, channels_last=False):
    """Pallas TPU equivalent of
        rearrange(images, 'b c (h p1) (w p2) -> b (h w) (p1 p2 c)').

    `images` is NCHW by default (matching the PyTorch module).  Pass
    channels_last=True with NHWC input to skip the XLA transpose pre-pass
    (saves a full HBM round trip).
    """
    p = patch_size
    if channels_last:
        B, H, W, C = images.shape
        x_nhwc = images
    else:
        B, C, H, W = images.shape
        # TODO(synk): this NCHW->NHWC transpose is a full extra HBM round trip
        # (XLA copy); see module-level TODO for why it is not fused in-kernel.
        x_nhwc = jnp.transpose(images, (0, 2, 3, 1))
    assert H % p == 0 and W % p == 0, "spatial dims must be divisible by patch_size"
    h, w = H // p, W // p
    pc, ppc = p * C, p * p * C

    # Free row-major reinterpretation: (B*h, p1, w, p2*C) rows-of-patches.
    x = x_nhwc.reshape(B * h, p, w, pc)

    n_rows = B * h
    R = _choose_row_chunk(n_rows, _padded_row_bytes(p, w, pc, x.dtype.itemsize))
    use_concat = _concat_kernel_supported(p, pc, jnp.dtype(x.dtype).name)

    out = _pallas_patches(x, p, pc, R, use_concat)

    # Free row-major collapse to (B, h*w, p*p*C).
    return out.reshape(B, h * w, ppc)


def _reference(images_nchw, patch_size):
    # Pure-JAX replica of the einops rearrange, for correctness checking.
    B, C, H, W = images_nchw.shape
    p = patch_size
    h, w = H // p, W // p
    x = images_nchw.reshape(B, C, h, p, w, p)
    x = jnp.transpose(x, (0, 2, 4, 3, 5, 1))  # b h w p1 p2 c
    return x.reshape(B, h * w, p * p * C)


if __name__ == "__main__":
    key = jax.random.PRNGKey(0)
    B, C, H, W = 2, 3, 24, 24
    patch_size = 6
    images = jax.random.normal(key, (B, C, H, W), dtype=jnp.float32)

    patches = jax.block_until_ready(extract_patches(images, patch_size=patch_size))

    expected_shape = (B, (H // patch_size) * (W // patch_size),
                      patch_size * patch_size * C)
    assert patches.shape == expected_shape, patches.shape

    ref = _reference(images, patch_size)
    assert jnp.array_equal(patches, ref), "Pallas patches mismatch vs reference"

    # NHWC fast path (no XLA transpose pre-pass) must give the same answer.
    patches_nhwc = jax.block_until_ready(
        extract_patches(jnp.transpose(images, (0, 2, 3, 1)),
                        patch_size=patch_size, channels_last=True))
    assert jnp.array_equal(patches_nhwc, ref), "NHWC fast path mismatch"

    print("KERNEL_OK")
</pallas_src>

<mosaic_0001>
module attributes {stable_mosaic.version = 11 : i64} {
  func.func @_patches_concat_kernel(%arg0: i32, %arg1: memref<1x6x8x18xf32, #tpu.memory_space<vmem>>, %arg2: memref<1x8x108xf32, #tpu.memory_space<vmem>>) attributes {dimension_semantics = [#tpu.dimension_semantics<parallel>], iteration_bounds = array<i64: 2>, scalar_prefetch = 0 : i64, scratch_operands = 0 : i64, tpu.core_type = #tpu.core_type<tc>, window_params = [{transform_indices = @transform_0, window_bounds = array<i64: 1, 6, 8, 18>}, {transform_indices = @transform_1, window_bounds = array<i64: 1, 8, 108>}]} {
    %c0 = arith.constant 0 : index
    %c0_0 = arith.constant 0 : index
    %c0_1 = arith.constant 0 : index
    %c0_2 = arith.constant 0 : index
    %0 = vector.load %arg1[%c0, %c0_0, %c0_1, %c0_2] : memref<1x6x8x18xf32, #tpu.memory_space<vmem>>, vector<1x1x8x18xf32>
    %1 = vector.shape_cast %0 : vector<1x1x8x18xf32> to vector<1x8x18xf32>
    %c0_3 = arith.constant 0 : index
    %c1 = arith.constant 1 : index
    %c0_4 = arith.constant 0 : index
    %c0_5 = arith.constant 0 : index
    %2 = vector.load %arg1[%c0_3, %c1, %c0_4, %c0_5] : memref<1x6x8x18xf32, #tpu.memory_space<vmem>>, vector<1x1x8x18xf32>
    %3 = vector.shape_cast %2 : vector<1x1x8x18xf32> to vector<1x8x18xf32>
    %c0_6 = arith.constant 0 : index
    %c2 = arith.constant 2 : index
    %c0_7 = arith.constant 0 : index
    %c0_8 = arith.constant 0 : index
    %4 = vector.load %arg1[%c0_6, %c2, %c0_7, %c0_8] : memref<1x6x8x18xf32, #tpu.memory_space<vmem>>, vector<1x1x8x18xf32>
    %5 = vector.shape_cast %4 : vector<1x1x8x18xf32> to vector<1x8x18xf32>
    %c0_9 = arith.constant 0 : index
    %c3 = arith.constant 3 : index
    %c0_10 = arith.constant 0 : index
    %c0_11 = arith.constant 0 : index
    %6 = vector.load %arg1[%c0_9, %c3, %c0_10, %c0_11] : memref<1x6x8x18xf32, #tpu.memory_space<vmem>>, vector<1x1x8x18xf32>
    %7 = vector.shape_cast %6 : vector<1x1x8x18xf32> to vector<1x8x18xf32>
    %c0_12 = arith.constant 0 : index
    %c4 = arith.constant 4 : index
    %c0_13 = arith.constant 0 : index
    %c0_14 = arith.constant 0 : index
    %8 = vector.load %arg1[%c0_12, %c4, %c0_13, %c0_14] : memref<1x6x8x18xf32, #tpu.memory_space<vmem>>, vector<1x1x8x18xf32>
    %9 = vector.shape_cast %8 : vector<1x1x8x18xf32> to vector<1x8x18xf32>
    %c0_15 = arith.constant 0 : index
    %c5 = arith.constant 5 : index
    %c0_16 = arith.constant 0 : index
    %c0_17 = arith.constant 0 : index
    %10 = vector.load %arg1[%c0_15, %c5, %c0_16, %c0_17] : memref<1x6x8x18xf32, #tpu.memory_space<vmem>>, vector<1x1x8x18xf32>
    %11 = vector.shape_cast %10 : vector<1x1x8x18xf32> to vector<1x8x18xf32>
    %12 = tpu.concatenate %1, %3, %5, %7, %9, %11 in 2 : vector<1x8x18xf32>, vector<1x8x18xf32>, vector<1x8x18xf32>, vector<1x8x18xf32>, vector<1x8x18xf32>, vector<1x8x18xf32> -> vector<1x8x108xf32>
    %c0_18 = arith.constant 0 : index
    %c0_19 = arith.constant 0 : index
    %c0_20 = arith.constant 0 : index
    %13 = vector.load %arg2[%c0_18, %c0_19, %c0_20] : memref<1x8x108xf32, #tpu.memory_space<vmem>>, vector<1x8x108xf32>
    tpu.vector_store %arg2[%c0_18, %c0_19, %c0_20], %12 {strides = array<i32>} : memref<1x8x108xf32, #tpu.memory_space<vmem>>, vector<1x8x108xf32>,
    return
  }
  func.func @transform_0(%arg0: i32) -> (i32, i32, i32, i32) {
    %c0_i32 = arith.constant 0 : i32
    %c0_i32_0 = arith.constant 0 : i32
    %c0_i32_1 = arith.constant 0 : i32
    %c0_i32_2 = arith.constant 0 : i32
    return %arg0, %c0_i32, %c0_i32_0, %c0_i32_1 : i32, i32, i32, i32
  }
  func.func @transform_1(%arg0: i32) -> (i32, i32, i32) {
    %c0_i32 = arith.constant 0 : i32
    %c0_i32_0 = arith.constant 0 : i32
    %c0_i32_1 = arith.constant 0 : i32
    return %arg0, %c0_i32, %c0_i32_0 : i32, i32, i32
  }
}

module attributes {stable_mosaic.version = 11 : i64} {
  func.func @_patches_store_kernel(%arg0: i32, %arg1: memref<1x6x4x18xf32, #tpu.memory_space<vmem>>, %arg2: memref<1x4x108xf32, #tpu.memory_space<vmem>>) attributes {dimension_semantics = [#tpu.dimension_semantics<parallel>], iteration_bounds = array<i64: 8>, scalar_prefetch = 0 : i64, scratch_operands = 0 : i64, tpu.core_type = #tpu.core_type<tc>, window_params = [{transform_indices = @transform_0, window_bounds = array<i64: 1, 6, 4, 18>}, {transform_indices = @transform_1, window_bounds = array<i64: 1, 4, 108>}]} {
    %c0 = arith.constant 0 : index
    %c0_0 = arith.constant 0 : index
    %c0_1 = arith.constant 0 : index
    %c0_2 = arith.constant 0 : index
    %0 = vector.load %arg1[%c0, %c0_0, %c0_1, %c0_2] : memref<1x6x4x18xf32, #tpu.memory_space<vmem>>, vector<1x1x4x18xf32>
    %1 = vector.shape_cast %0 : vector<1x1x4x18xf32> to vector<1x4x18xf32>
    %c0_3 = arith.constant 0 : index
    %c0_4 = arith.constant 0 : index
    %c0_5 = arith.constant 0 : index
    %2 = vector.load %arg2[%c0_3, %c0_4, %c0_5] : memref<1x4x108xf32, #tpu.memory_space<vmem>>, vector<1x4x18xf32>
    tpu.vector_store %arg2[%c0_3, %c0_4, %c0_5], %1 {strides = array<i32>} : memref<1x4x108xf32, #tpu.memory_space<vmem>>, vector<1x4x18xf32>,
    %c0_6 = arith.constant 0 : index
    %c1 = arith.constant 1 : index
    %c0_7 = arith.constant 0 : index
    %c0_8 = arith.constant 0 : index
    %3 = vector.load %arg1[%c0_6, %c1, %c0_7, %c0_8] : memref<1x6x4x18xf32, #tpu.memory_space<vmem>>, vector<1x1x4x18xf32>
    %4 = vector.shape_cast %3 : vector<1x1x4x18xf32> to vector<1x4x18xf32>
    %c0_9 = arith.constant 0 : index
    %c0_10 = arith.constant 0 : index
    %c18 = arith.constant 18 : index
    %5 = vector.load %arg2[%c0_9, %c0_10, %c18] : memref<1x4x108xf32, #tpu.memory_space<vmem>>, vector<1x4x18xf32>
    tpu.vector_store %arg2[%c0_9, %c0_10, %c18], %4 {strides = array<i32>} : memref<1x4x108xf32, #tpu.memory_space<vmem>>, vector<1x4x18xf32>,
    %c0_11 = arith.constant 0 : index
    %c2 = arith.constant 2 : index
    %c0_12 = arith.constant 0 : index
    %c0_13 = arith.constant 0 : index
    %6 = vector.load %arg1[%c0_11, %c2, %c0_12, %c0_13] : memref<1x6x4x18xf32, #tpu.memory_space<vmem>>, vector<1x1x4x18xf32>
    %7 = vector.shape_cast %6 : vector<1x1x4x18xf32> to vector<1x4x18xf32>
    %c0_14 = arith.constant 0 : index
    %c0_15 = arith.constant 0 : index
    %c36 = arith.constant 36 : index
    %8 = vector.load %arg2[%c0_14, %c0_15, %c36] : memref<1x4x108xf32, #tpu.memory_space<vmem>>, vector<1x4x18xf32>
    tpu.vector_store %arg2[%c0_14, %c0_15, %c36], %7 {strides = array<i32>} : memref<1x4x108xf32, #tpu.memory_space<vmem>>, vector<1x4x18xf32>,
    %c0_16 = arith.constant 0 : index
    %c3 = arith.constant 3 : index
    %c0_17 = arith.constant 0 : index
    %c0_18 = arith.constant 0 : index
    %9 = vector.load %arg1[%c0_16, %c3, %c0_17, %c0_18] : memref<1x6x4x18xf32, #tpu.memory_space<vmem>>, vector<1x1x4x18xf32>
    %10 = vector.shape_cast %9 : vector<1x1x4x18xf32> to vector<1x4x18xf32>
    %c0_19 = arith.constant 0 : index
    %c0_20 = arith.constant 0 : index
    %c54 = arith.constant 54 : index
    %11 = vector.load %arg2[%c0_19, %c0_20, %c54] : memref<1x4x108xf32, #tpu.memory_space<vmem>>, vector<1x4x18xf32>
    tpu.vector_store %arg2[%c0_19, %c0_20, %c54], %10 {strides = array<i32>} : memref<1x4x108xf32, #tpu.memory_space<vmem>>, vector<1x4x18xf32>,
    %c0_21 = arith.constant 0 : index
    %c4 = arith.constant 4 : index
    %c0_22 = arith.constant 0 : index
    %c0_23 = arith.constant 0 : index
    %12 = vector.load %arg1[%c0_21, %c4, %c0_22, %c0_23] : memref<1x6x4x18xf32, #tpu.memory_space<vmem>>, vector<1x1x4x18xf32>
    %13 = vector.shape_cast %12 : vector<1x1x4x18xf32> to vector<1x4x18xf32>
    %c0_24 = arith.constant 0 : index
    %c0_25 = arith.constant 0 : index
    %c72 = arith.constant 72 : index
    %14 = vector.load %arg2[%c0_24, %c0_25, %c72] : memref<1x4x108xf32, #tpu.memory_space<vmem>>, vector<1x4x18xf32>
    tpu.vector_store %arg2[%c0_24, %c0_25, %c72], %13 {strides = array<i32>} : memref<1x4x108xf32, #tpu.memory_space<vmem>>, vector<1x4x18xf32>,
    %c0_26 = arith.constant 0 : index
    %c5 = arith.constant 5 : index
    %c0_27 = arith.constant 0 : index
    %c0_28 = arith.constant 0 : index
    %15 = vector.load %arg1[%c0_26, %c5, %c0_27, %c0_28] : memref<1x6x4x18xf32, #tpu.memory_space<vmem>>, vector<1x1x4x18xf32>
    %16 = vector.shape_cast %15 : vector<1x1x4x18xf32> to vector<1x4x18xf32>
    %c0_29 = arith.constant 0 : index
    %c0_30 = arith.constant 0 : index
    %c90 = arith.constant 90 : index
    %17 = vector.load %arg2[%c0_29, %c0_30, %c90] : memref<1x4x108xf32, #tpu.memory_space<vmem>>, vector<1x4x18xf32>
    tpu.vector_store %arg2[%c0_29, %c0_30, %c90], %16 {strides = array<i32>} : memref<1x4x108xf32, #tpu.memory_space<vmem>>, vector<1x4x18xf32>,
    return
  }
  func.func @transform_0(%arg0: i32) -> (i32, i32, i32, i32) {
    %c0_i32 = arith.constant 0 : i32
    %c0_i32_0 = arith.constant 0 : i32
    %c0_i32_1 = arith.constant 0 : i32
    %c0_i32_2 = arith.constant 0 : i32
    return %arg0, %c0_i32, %c0_i32_0, %c0_i32_1 : i32, i32, i32, i32
  }
  func.func @transform_1(%arg0: i32) -> (i32, i32, i32) {
    %c0_i32 = arith.constant 0 : i32
    %c0_i32_0 = arith.constant 0 : i32
    %c0_i32_1 = arith.constant 0 : i32
    return %arg0, %c0_i32, %c0_i32_0 : i32, i32, i32
  }
}

</mosaic_0001>

<bundles_post_ra>
// kernel: tpu_custom_call.1
= control target key start
LH: loop header
LB: loop body
LE: loop exit
PB: predicated region body
PF: predicated region fallthrough
CT: control target
= control target key end

     0   :  { %6 = vsyncpa [#allocation3], 0  ;;  %s587_s0 = inlined_call_operand.hbm [shape: f32[2,6,8,18], index: 0, kind: input, shape index: {}]   ;;  %s588_s1 = inlined_call_operand.hbm [shape: f32[2,8,108], index: 1, kind: output, shape index: {}]  }
   0x1   :  { %8 = vsyncpa [#allocation3 + $0x1], 0 }
   0x2   :  { %9 = vsyncpa [#allocation4], 0 }
   0x3   :  { %11 = vsyncpa [#allocation4 + $0x1], 0  ;;  %s446_s6 = smov 0   ;;  %s448_s7 = smov 0  }
   0x4   :  { %s450_s8 = smov 0   ;;  %s452_s9 = smov 0  }
   0x5 LB: > { %s467_s10 = sadd.s32 4294967295, %s425_s9   ;;  %s262_s11 = sadd.s32 4294967294, %s425_s9   ;;  %s425_s9 = sphi %s452_s9, %s602_s9   ;;  %s421_s8 = sphi %s450_s8, %s601_s8   ;;  %s417_s7 = sphi %s448_s7, %s600_s7   ;;  %s413_s6 = sphi %s446_s6, %s599_s6  }
   0x6   : > { %s471_s12 = sadd.s32 1, %s425_s9   ;;  %s24_s13 = sadd.s32 1, %s421_s8 }
   0x7   : > { %s21_s14 = ssub.s32 %s425_s9, %s471_s12  ;;  %p31_p0 = scmp.ne.s32.totalorder %s421_s8, %s417_s7 }
   0x8   : > { %p22_p1 = scmp.eq.s32.totalorder %s21_s14, 0  ;;  %p32_p2 = scmp.eq.s32.totalorder %s425_s9, 0 }
   0x9   : > { %p37_p3 = scmp.ne.s32.totalorder %s417_s7, %s413_s6  ;;  %p38_p4 = scmp.eq.s32.totalorder %s467_s10, 0 }
   0xa   : > { %s483_s15 = scalar_select %p22_p1, %s421_s8, %s24_s13  }
   0xb   : > { %p33_p5 = por %p32_p2, %p31_p0  ;;  %p485_p6 = por %p38_p4, %p37_p3 }
   0xc   : > { %p61_p7 = scmp.eq.s32.totalorder %s467_s10, 1  ;;  %p67_p8 = scmp.eq.s32.totalorder %s262_s11, 1 }
   0xd   : > { %s591_s16 = scalar_select %p485_p6, 1, 0 }
   0xe   : > { %p292_p10 = scmp.lt.s32.totalorder %s425_s9, 2  ;;  %p492_p11 = por %p61_p7, %p31_p0 }
   0xf   : > { %p496_p12 = por %p67_p8, %p37_p3  ;;  %s87_s19 = sand.u32 1, %s421_s8  }
  0x10   : > { %s592_s17 = scalar_select %p492_p11, 1, 0 }
  0x11   : > { %s593_s18 = scalar_select %p496_p12, 1, 0 }
  0x12   : > { %s278_s20 = smul.u32 768, %s425_s9  ;;  %p507_p13 = pnand %p292_p10, %p33_p5 }
  0x13   : > { %s277_s21 = smul.u32 48, %s87_s19  ;;  %s513_s28 = scalar_lea.sflag [#allocation3], %s87_s19 }
  0x14   : > { %s505_s24 = scalar_lea.hbm %s587_s0, %s278_s20  ;;  %p335_p1 = pneg %p507_p13 }
  0x15   : > { %s91_s26 = scalar_lea.vmem [#allocation2], %s277_s21  ;;  %s333_s29 = scalar_lea.hbm %s505_s24, 768 }
  0x16   : > { %s98_s27 = sshll.u32 %s91_s26, 4  ;;  %p334_p0 = scmp.ne.s32.totalorder %s505_s24, %s333_s29  ;;  %s511_s27 = int_to_ptr.vmem [resolvable:$true] %s98_s27 }
  0x17   : > { %s338_s3 = scalar_lea.hbm %s587_s0, 1536  ;;  %p339_p4 = scmp.lt.s32.totalorder %s505_s24, %s587_s0 }
  0x18   : > { %p336_p2 = pnand %p335_p1, %p334_p0  ;;  %p340_p5 = scmp.lt.s32.totalorder %s338_s3, %s333_s29 }
  0x1a   : > { %p337_p3 = pneg %p336_p2  ;;  %p341_p7 = por %p340_p5, %p339_p4 }
  0x1c   : > { %p342_p8 = pnand %p341_p7, %p337_p3 }
  0x1e   : > { %345 = shalt.err (!%p342_p8)
}
  0x1f   : > { %s346_s11 = scalar_lea.vmem %s511_s27, 768  ;;  %s427_s13 = smov [#allocation2]  }
  0x20   : > { %p347_p10 = scmp.ne.s32.totalorder %s511_s27, %s346_s11  ;;  %s351_s14 = sshll.u32 %s427_s13, 4  ;;  %s352_s14 = int_to_ptr.vmem [resolvable:$false] %s351_s14 }
  0x21   : > { %s353_s19 = scalar_lea.vmem %s352_s14, 1536  ;;  %p354_p2 = scmp.lt.s32.totalorder %s511_s27, %s352_s14 }
  0x22   : > { %p349_p9 = pnand %p347_p10, %p335_p1  ;;  %p355_p12 = scmp.lt.s32.totalorder %s353_s19, %s346_s11 }
  0x24   : > { %p350_p0 = pneg %p349_p9  ;;  %p356_p11 = por %p355_p12, %p354_p2 }
  0x26   : > { %p357_p6 = pnand %p356_p11, %p350_p0 }
  0x28   : > { %360 = shalt.err (!%p357_p6)
}
  0x29   : > { %s428_s20 = smov 128   ;;  %s429_s21 = smov 8  }
  0x2a   : > { %287 = dma.hbm_to_vmem [thread:$0]  (!%p507_p13), %s505_s24, 768, %s511_s27, %s513_s28, %s428_s20, %s428_s20, %s429_s21  }
  0x2b   : > { %p266_p9 = scmp.ge.s32.totalorder %s425_s9, 1  ;;  %p106_p1 = scmp.lt.s32.totalorder %s425_s9, 3 }
  0x2d   : > { %p107_p3 = pnand %p266_p9, %p106_p1 }
  0x2e   : > { %s537_s22 = sand.u32 (!%p107_p3), 1, %s417_s7   ;;  %p595_p6 = scmp.ne.s32.totalorder (!%p107_p3), %s591_s16, 0 }
  0x2f   : > { %110 = sbr.rel (%p107_p3) target bundleno = 191 (0xbf), region = 24  ;;  %s113_s26 = scalar_lea.sflag (!%p107_p3), [#allocation3], %s537_s22 }
  0x30   : > { %s279_s23 = smul.u32 (!%p107_p3), 48, %s537_s22 }
  0x32   : > { %s116_s29 = scalar_lea.vmem (!%p107_p3), [#allocation2], %s279_s23 }
  0x34   : > { %404 = dma.done.wait (%p595_p6), %s113_s26, 768  }
  0x35   : > { %406 = vsyncadd (%p595_p6), %s113_s26, 4294966528  ;;  %v268_v0 = vld [vmem:[%s116_s29 + $0x8] sm:$0xff]  ;;  %v270_v1 = vld [vmem:[%s116_s29 + $0x18] sm:$0xff]  ;;  %s430_s24 = smov 18   ;;  %s431_s25 = smov 54   ;;  %vm166_vm0 = vcmask 146432  }
  0x36   : > { %147 = vrot.lane.b32.xlu0 %v268_v0, %s430_s24  ;;  %155 = vrot.lane.b32.xlu1 %v270_v1, %s431_s25  ;;  %v269_v2 = vld [vmem:[%s116_s29 + $0x10] sm:$0xff]  ;;  %v271_v3 = vld [vmem:[%s116_s29 + $0x20] sm:$0xff]  ;;  %s432_s27 = smov 36   ;;  %s433_s28 = smov 72   ;;  %vm168_vm1 = vcmask 293888   ;;  %vm170_vm2 = vcmask 441344  }
  0x37   : > { %v272_v4 = vld [vmem:[%s116_s29 + $0x28] sm:$0xff]  ;;  %s434_s30 = smov 90   ;;  %s267_s2 = sshll.u32 %s537_s22, 3  ;;  %v135_v7 = vld [vmem:[%s116_s29] sm:$0xff]  ;;  %vm172_vm3 = vcmask 588800   ;;  %vm174_vm4 = vcmask 736256  }
  0x38   : > { %s274_s16 = sshll.u32 %s467_s10, 7  ;;  %s134_s3 = scalar_lea.vmem [#allocation5], %s267_s2  ;;  %vm176_vm5 = vcmask 883712  }
  0x39   : > { %s192_s4 = sshll.u32 %s134_s3, 4  ;;  %s550_s13 = scalar_lea.hbm %s588_s1, %s274_s16  ;;  %s193_s4 = int_to_ptr.vmem [resolvable:$true] %s192_s4 }
  0x3a   : > { %151 = vrot.lane.b32.xlu0 %v269_v2, %s432_s27  ;;  %159 = vrot.lane.b32.xlu1 %v271_v3, %s433_s28  ;;  %s179_s14 = scalar_lea.sflag [#allocation4], %s537_s22  ;;  %s361_s19 = scalar_lea.vmem %s193_s4, 128 }
  0x3b   : > { %p362_p11 = scmp.ne.s32.totalorder %s193_s4, %s361_s19  ;;  %p596_p12 = scmp.ne.s32.totalorder %s592_s17, 0 }
  0x3c   : > { %s435_s10 = smov [#allocation5]  }
  0x3d   : > { %p363_p13 = pnand %p362_p11, %p596_p12  ;;  %s365_s20 = sshll.u32 %s435_s10, 4  ;;  %s366_s20 = int_to_ptr.vmem [resolvable:$false] %s365_s20 }
  0x3e   : > { %163 = vrot.lane.b32.xlu0 %v272_v4, %s434_s30  ;;  %s367_s21 = scalar_lea.vmem %s366_s20, 256  ;;  %p368_p5 = scmp.lt.s32.totalorder %s193_s4, %s366_s20 }
  0x3f   : > { %p364_p4 = pneg %p363_p13  ;;  %p369_p7 = scmp.lt.s32.totalorder %s367_s21, %s361_s19 }
  0x41   : > { %p370_p8 = por %p369_p7, %p368_p5 }
  0x43   : > { %p371_p10 = pnand %p370_p8, %p364_p4 }
  0xa8   : > { %v148_v5 = vpop.permute.xlu0 %147  ;;  %v156_v6 = vpop.permute.xlu1 %155 }
  0xa9   : > { %v167_v8 = vsel %vm166_vm0, %v135_v7, %v148_v5 }
  0xac   : > { %v152_v9 = vpop.permute.xlu0 %151  ;;  %v160_v10 = vpop.permute.xlu1 %159 }
  0xad   : > { %v169_v11 = vsel %vm168_vm1, %v167_v8, %v152_v9 }
  0xae   : > { %v171_v12 = vsel %vm170_vm2, %v169_v11, %v156_v6 }
  0xaf   : > { %v173_v13 = vsel %vm172_vm3, %v171_v12, %v160_v10 }
  0xb0   : > { %v164_v14 = vpop.permute.xlu0 %163 }
  0xb1   : > { %v175_v15 = vsel %vm174_vm4, %v173_v13, %v164_v14 }
  0xb2   : > { %177 = vst.msk [vmem:[%s134_s3] sm:$0xff] %vm176_vm5, %v175_v15 }
  0xb3   : > { %374 = shalt.err (!%p371_p10)
}
  0xb4   : > { %s375_s23 = scalar_lea.hbm %s550_s13, 128  ;;  %s379_s29 = scalar_lea.hbm %s588_s1, 256 }
  0xb5   : > { %p376_p0 = scmp.ne.s32.totalorder %s550_s13, %s375_s23  ;;  %p380_p1 = scmp.lt.s32.totalorder %s550_s13, %s588_s1 }
  0xb6   : > { %p381_p3 = scmp.lt.s32.totalorder %s379_s29, %s375_s23 }
  0xb7   : > { %p377_p2 = pnand %p376_p0, %p596_p12 }
  0xb8   : > { %p382_p6 = por %p381_p3, %p380_p1 }
  0xb9   : > { %p378_p9 = pneg %p377_p2 }
  0xbb   : > { %p383_p11 = pnand %p382_p6, %p378_p9 }
  0xbd   : > { %386 = shalt.err (!%p383_p11)
}
  0xbe   : > { %282 = dma.vmem_to_hbm [thread:$0]  (%p596_p12), %s193_s4, 128, %s550_s13, %s179_s14  }
  0xbf PF: > { %s204_s27 = sand.u32 1, %s413_s6   ;;  %p597_p13 = scmp.ne.s32.totalorder %s593_s18, 0 }
  0xc0   : > { %p598_p4 = scmp.ge.s32.totalorder %s425_s9, 2  ;;  %s205_s28 = scalar_lea.sflag [#allocation4], %s204_s27 }
  0xc2   : > { %p289_p5 = pnand %p598_p4, %p597_p13 }
  0xc4   : > { %p290_p7 = pneg %p289_p5 }
  0xc6   : > { %408 = dma.done.wait (%p290_p7), %s205_s28, 128  }
  0xc7   : > { %410 = vsyncadd (%p290_p7), %s205_s28, 4294967168  ;;  %p14_p8 = scmp.ge.s32.totalorder %s471_s12, 4   ;;  %s599_s6 = smov %s417_s7 }
  0xc8   : > { %s600_s7 = smov %s421_s8  ;;  %s601_s8 = smov %s483_s15 }
  0xc9   : > { %s602_s9 = smov %s471_s12  ;;  %16 = sbr.rel (!%p14_p8) target bundleno = 5 (0x5), region = 74 }
  0xce   :  { %210 = vsyncpa [#allocation3], 1 }
  0xcf   :  { %212 = vsyncpa [#allocation3 + $0x1], 1 }
  0xd0   :  { %213 = vsyncpa [#allocation4], 1 }
  0xd1   :  { %215 = vsyncpa [#allocation4 + $0x1], 1 }

// kernel: tpu_custom_call.1
= control target key start
LH: loop header
LB: loop body
LE: loop exit
PB: predicated region body
PF: predicated region fallthrough
CT: control target
= control target key end

     0   :  { %6 = vsyncpa [#allocation3], 0  ;;  %s585_s0 = inlined_call_operand.hbm [shape: f32[8,6,4,18], index: 0, kind: input, shape index: {}]   ;;  %s586_s1 = inlined_call_operand.hbm [shape: f32[8,4,108], index: 1, kind: output, shape index: {}]  }
   0x1   :  { %8 = vsyncpa [#allocation3 + $0x1], 0 }
   0x2   :  { %9 = vsyncpa [#allocation4], 0 }
   0x3   :  { %11 = vsyncpa [#allocation4 + $0x1], 0  ;;  %s446_s6 = smov 0   ;;  %s448_s7 = smov 0  }
   0x4   :  { %s450_s8 = smov 0   ;;  %s452_s9 = smov 0  }
   0x5 LB: > { %s467_s10 = sadd.s32 4294967295, %s425_s9   ;;  %s262_s11 = sadd.s32 4294967294, %s425_s9   ;;  %s425_s9 = sphi %s452_s9, %s599_s9   ;;  %s421_s8 = sphi %s450_s8, %s598_s8   ;;  %s417_s7 = sphi %s448_s7, %s597_s7   ;;  %s413_s6 = sphi %s446_s6, %s596_s6  }
   0x6   : > { %s471_s12 = sadd.s32 1, %s425_s9   ;;  %s24_s13 = sadd.s32 1, %s421_s8 }
   0x7   : > { %s21_s14 = ssub.s32 %s425_s9, %s471_s12  ;;  %p31_p0 = scmp.ne.s32.totalorder %s421_s8, %s417_s7 }
   0x8   : > { %p22_p1 = scmp.eq.s32.totalorder %s21_s14, 0  ;;  %p32_p2 = scmp.eq.s32.totalorder %s425_s9, 0 }
   0x9   : > { %p37_p3 = scmp.ne.s32.totalorder %s417_s7, %s413_s6  ;;  %p38_p4 = scmp.eq.s32.totalorder %s467_s10, 0 }
   0xa   : > { %s483_s15 = scalar_select %p22_p1, %s421_s8, %s24_s13  }
   0xb   : > { %p33_p5 = por %p32_p2, %p31_p0  ;;  %p485_p6 = por %p38_p4, %p37_p3 }
   0xc   : > { %p61_p7 = scmp.eq.s32.totalorder %s467_s10, 7  ;;  %p67_p8 = scmp.eq.s32.totalorder %s262_s11, 7 }
   0xd   : > { %s589_s16 = scalar_select %p485_p6, 1, 0 }
   0xe   : > { %p292_p9 = scmp.lt.s32.totalorder %s425_s9, 8  ;;  %p491_p10 = por %p61_p7, %p31_p0 }
   0xf   : > { %p495_p11 = por %p67_p8, %p37_p3  ;;  %s87_s19 = sand.u32 1, %s421_s8  }
  0x10   : > { %s590_s17 = scalar_select %p491_p10, 1, 0 }
  0x11   : > { %s591_s18 = scalar_select %p495_p11, 1, 0 }
  0x12   : > { %s278_s20 = smul.u32 384, %s425_s9  ;;  %p506_p12 = pnand %p292_p9, %p33_p5 }
  0x13   : > { %s277_s21 = smul.u32 24, %s87_s19  ;;  %s512_s28 = scalar_lea.sflag [#allocation3], %s87_s19 }
  0x14   : > { %s504_s24 = scalar_lea.hbm %s585_s0, %s278_s20  ;;  %p335_p0 = pneg %p506_p12 }
  0x15   : > { %s91_s26 = scalar_lea.vmem [#allocation2], %s277_s21  ;;  %s333_s29 = scalar_lea.hbm %s504_s24, 384 }
  0x16   : > { %s98_s27 = sshll.u32 %s91_s26, 4  ;;  %p334_p13 = scmp.ne.s32.totalorder %s504_s24, %s333_s29  ;;  %s510_s27 = int_to_ptr.vmem [resolvable:$true] %s98_s27 }
  0x17   : > { %s338_s3 = scalar_lea.hbm %s585_s0, 3072  ;;  %p339_p3 = scmp.lt.s32.totalorder %s504_s24, %s585_s0 }
  0x18   : > { %p336_p1 = pnand %p335_p0, %p334_p13  ;;  %p340_p4 = scmp.lt.s32.totalorder %s338_s3, %s333_s29 }
  0x1a   : > { %p337_p2 = pneg %p336_p1  ;;  %p341_p5 = por %p340_p4, %p339_p3 }
  0x1c   : > { %p342_p7 = pnand %p341_p5, %p337_p2 }
  0x1e   : > { %345 = shalt.err (!%p342_p7)
}
  0x1f   : > { %s346_s11 = scalar_lea.vmem %s510_s27, 384  ;;  %s427_s13 = smov [#allocation2]  }
  0x20   : > { %p347_p8 = scmp.ne.s32.totalorder %s510_s27, %s346_s11  ;;  %s351_s14 = sshll.u32 %s427_s13, 4  ;;  %s352_s14 = int_to_ptr.vmem [resolvable:$false] %s351_s14 }
  0x21   : > { %s353_s19 = scalar_lea.vmem %s352_s14, 768  ;;  %p354_p1 = scmp.lt.s32.totalorder %s510_s27, %s352_s14 }
  0x22   : > { %p349_p9 = pnand %p347_p8, %p335_p0  ;;  %p355_p11 = scmp.lt.s32.totalorder %s353_s19, %s346_s11 }
  0x24   : > { %p350_p13 = pneg %p349_p9  ;;  %p356_p10 = por %p355_p11, %p354_p1 }
  0x26   : > { %p357_p6 = pnand %p356_p10, %p350_p13 }
  0x28   : > { %360 = shalt.err (!%p357_p6)
}
  0x29   : > { %s428_s20 = smov 64   ;;  %s429_s21 = smov 4  }
  0x2a   : > { %287 = dma.hbm_to_vmem [thread:$0]  (!%p506_p12), %s504_s24, 384, %s510_s27, %s512_s28, %s428_s20, %s428_s20, %s429_s21  }
  0x2b   : > { %p266_p0 = scmp.ge.s32.totalorder %s425_s9, 1  ;;  %p106_p2 = scmp.lt.s32.totalorder %s425_s9, 9 }
  0x2d   : > { %p107_p3 = pnand %p266_p0, %p106_p2 }
  0x2e   : > { %s536_s22 = sand.u32 (!%p107_p3), 1, %s417_s7   ;;  %p593_p6 = scmp.ne.s32.totalorder (!%p107_p3), %s589_s16, 0 }
  0x2f   : > { %110 = sbr.rel (%p107_p3) target bundleno = 191 (0xbf), region = 24  ;;  %s113_s26 = scalar_lea.sflag (!%p107_p3), [#allocation3], %s536_s22 }
  0x30   : > { %s279_s23 = smul.u32 (!%p107_p3), 24, %s536_s22 }
  0x32   : > { %s116_s29 = scalar_lea.vmem (!%p107_p3), [#allocation2], %s279_s23 }
  0x34   : > { %404 = dma.done.wait (%p593_p6), %s113_s26, 384  }
  0x35   : > { %406 = vsyncadd (%p593_p6), %s113_s26, 4294966912  ;;  %s267_s24 = sshll.u32 %s536_s22, 2  ;;  %v268_v0 = vld [vmem:[%s116_s29 + $0x4] sm:$0xf]  ;;  %v270_v1 = vld [vmem:[%s116_s29 + $0xc] sm:$0xf] }
  0x36   : > { %vm136_vm0 = vcmask 142336   ;;  %s430_s25 = smov 18   ;;  %s431_s27 = smov 54   ;;  %v269_v2 = vld [vmem:[%s116_s29 + $0x8] sm:$0xf]  ;;  %vm144_vm1 = vcmask 289936  }
  0x37   : > { %141 = vrot.lane.b32.xlu0 %v268_v0, %s430_s25  ;;  %157 = vrot.lane.b32.xlu1 %v270_v1, %s431_s27  ;;  %v271_v3 = vld [vmem:[%s116_s29 + $0x10] sm:$0xf]  ;;  %v135_v4 = vld [vmem:[%s116_s29] sm:$0xf]  ;;  %s134_s28 = scalar_lea.vmem [#allocation5], %s267_s24  ;;  %s432_s30 = smov 36  }
  0x38   : > { %137 = vst.msk [vmem:[%s134_s28] sm:$0xf] %vm136_vm0, %v135_v4  ;;  %s433_s2 = smov 72   ;;  %v272_v5 = vld [vmem:[%s116_s29 + $0x14] sm:$0xf]  ;;  %s434_s16 = smov 90  }
  0x39   : > { %vm152_vm2 = vcmask 437536   ;;  %vm160_vm3 = vcmask 585136   ;;  %vm168_vm4 = vcmask 732736   ;;  %s274_s3 = sshll.u32 %s467_s10, 6  ;;  %s192_s4 = sshll.u32 %s134_s28, 4  ;;  %vm176_vm5 = vcmask 880336   ;;  %s193_s4 = int_to_ptr.vmem [resolvable:$true] %s192_s4 }
  0x3a   : > { %s549_s13 = scalar_lea.hbm %s586_s1, %s274_s3  ;;  %s179_s14 = scalar_lea.sflag [#allocation4], %s536_s22 }
  0x3b   : > { %149 = vrot.lane.b32.xlu0 %v269_v2, %s432_s30  ;;  %165 = vrot.lane.b32.xlu1 %v271_v3, %s433_s2  ;;  %s361_s19 = scalar_lea.vmem %s193_s4, 64  ;;  %p594_p11 = scmp.ne.s32.totalorder %s590_s17, 0 }
  0x3c   : > { %p362_p10 = scmp.ne.s32.totalorder %s193_s4, %s361_s19  ;;  %s435_s10 = smov [#allocation5]  }
  0x3d   : > { %s365_s20 = sshll.u32 %s435_s10, 4  ;;  %s366_s20 = int_to_ptr.vmem [resolvable:$false] %s365_s20 }
  0x3e   : > { %p363_p12 = pnand %p362_p10, %p594_p11  ;;  %s367_s21 = scalar_lea.vmem %s366_s20, 128 }
  0x3f   : > { %173 = vrot.lane.b32.xlu0 %v272_v5, %s434_s16  ;;  %p368_p5 = scmp.lt.s32.totalorder %s193_s4, %s366_s20  ;;  %p369_p7 = scmp.lt.s32.totalorder %s367_s21, %s361_s19 }
  0x40   : > { %p364_p4 = pneg %p363_p12 }
  0x41   : > { %p370_p8 = por %p369_p7, %p368_p5 }
  0x43   : > { %p371_p9 = pnand %p370_p8, %p364_p4 }
  0xa9   : > { %v142_v6 = vpop.permute.xlu0 %141  ;;  %v158_v7 = vpop.permute.xlu1 %157 }
  0xaa   : > { %145 = vst.msk [vmem:[%s134_s28] sm:$0xf] %vm144_vm1, %v142_v6 }
  0xad   : > { %v150_v8 = vpop.permute.xlu0 %149  ;;  %v166_v9 = vpop.permute.xlu1 %165 }
  0xae   : > { %153 = vst.msk [vmem:[%s134_s28] sm:$0xf] %vm152_vm2, %v150_v8 }
  0xaf   : > { %161 = vst.msk [vmem:[%s134_s28] sm:$0xf] %vm160_vm3, %v158_v7 }
  0xb0   : > { %169 = vst.msk [vmem:[%s134_s28] sm:$0xf] %vm168_vm4, %v166_v9 }
  0xb1   : > { %v174_v10 = vpop.permute.xlu0 %173 }
  0xb2   : > { %177 = vst.msk [vmem:[%s134_s28] sm:$0xf] %vm176_vm5, %v174_v10 }
  0xb3   : > { %374 = shalt.err (!%p371_p9)
}
  0xb4   : > { %s375_s23 = scalar_lea.hbm %s549_s13, 64  ;;  %s379_s29 = scalar_lea.hbm %s586_s1, 512 }
  0xb5   : > { %p376_p13 = scmp.ne.s32.totalorder %s549_s13, %s375_s23  ;;  %p380_p2 = scmp.lt.s32.totalorder %s549_s13, %s586_s1 }
  0xb6   : > { %p381_p3 = scmp.lt.s32.totalorder %s379_s29, %s375_s23 }
  0xb7   : > { %p377_p1 = pnand %p376_p13, %p594_p11 }
  0xb8   : > { %p382_p6 = por %p381_p3, %p380_p2 }
  0xb9   : > { %p378_p0 = pneg %p377_p1 }
  0xbb   : > { %p383_p10 = pnand %p382_p6, %p378_p0 }
  0xbd   : > { %386 = shalt.err (!%p383_p10)
}
  0xbe   : > { %282 = dma.vmem_to_hbm [thread:$0]  (%p594_p11), %s193_s4, 64, %s549_s13, %s179_s14  }
  0xbf PF: > { %p293_p12 = scmp.ge.s32.totalorder %s425_s9, 2  ;;  %s204_s27 = sand.u32 1, %s413_s6  }
  0xc0   : > { %p595_p4 = scmp.ne.s32.totalorder %s591_s18, 0  ;;  %s205_s28 = scalar_lea.sflag [#allocation4], %s204_s27 }
  0xc2   : > { %p289_p5 = pnand %p293_p12, %p595_p4 }
  0xc4   : > { %p290_p7 = pneg %p289_p5 }
  0xc6   : > { %408 = dma.done.wait (%p290_p7), %s205_s28, 64  }
  0xc7   : > { %410 = vsyncadd (%p290_p7), %s205_s28, 4294967232  ;;  %p14_p8 = scmp.ge.s32.totalorder %s471_s12, 10   ;;  %s596_s6 = smov %s417_s7 }
  0xc8   : > { %s597_s7 = smov %s421_s8  ;;  %s598_s8 = smov %s483_s15 }
  0xc9   : > { %s599_s9 = smov %s471_s12  ;;  %16 = sbr.rel (!%p14_p8) target bundleno = 5 (0x5), region = 74 }
  0xce   :  { %210 = vsyncpa [#allocation3], 1 }
  0xcf   :  { %212 = vsyncpa [#allocation3 + $0x1], 1 }
  0xd0   :  { %213 = vsyncpa [#allocation4], 1 }
  0xd1   :  { %215 = vsyncpa [#allocation4 + $0x1], 1 }

</bundles_post_ra>
